<compile_context>
chip_gen: v6e
topology: v6e:2x2x1
jax: 0.10.0
libtpu: 0.0.40
codegen_flags: <defaults>
</compile_context>

<pallas_src>
import functools

import jax
import jax.numpy as jnp
from jax.experimental import pallas as pl
from jax.experimental.pallas import tpu as pltpu

_F32 = 4  # bytes


# ----------------------------------------------------------------------------
# Generation-aware VMEM sizing.
# ----------------------------------------------------------------------------
@functools.lru_cache(maxsize=None)
def _vmem_capacity_bytes():
    """Physical VMEM per core; conservative 64 MiB (v7x) if the query fails."""
    try:
        info = pltpu.get_tpu_info()
        for name in ("vmem_capacity_bytes", "vmem_bytes", "vmem_size_bytes"):
            cap = getattr(info, name, None)
            if cap:
                return int(cap)
    except Exception:
        pass
    return 64 * 2**20


def _vmem_budget_bytes():
    # Working-set budget for the block chooser: ~45 MiB on v7x, ~90 MiB on
    # v5e/v6e, leaving headroom for Mosaic scratch and pipeline bookkeeping.
    return int(_vmem_capacity_bytes() * 0.70)


def _vmem_hard_cap_bytes():
    # vmem_limit_bytes must never exceed the physical VMEM of the part
    # (v7x has only 64 MiB; v5e/v6e have 128 MiB).
    return int(_vmem_capacity_bytes() * 0.85)


def _vmem_limit_bytes(est):
    return int(min(_vmem_hard_cap_bytes(), max(32 * 2**20, 2 * est)))


# ----------------------------------------------------------------------------
# Feature probes (cached): decide once whether the optimized layouts lower.
# ----------------------------------------------------------------------------
@functools.lru_cache(maxsize=None)
def _single_buffer_ok():
    """Does this build accept pipeline_mode=pl.Buffered(1) on a constant block?"""
    def k(x_ref, w_ref, o_ref):
        o_ref[...] = x_ref[...] + w_ref[...]

    try:
        w_spec = pl.BlockSpec((8, 128), lambda i: (0, 0),
                              pipeline_mode=pl.Buffered(1))
        out = pl.pallas_call(
            k,
            out_shape=jax.ShapeDtypeStruct((16, 128), jnp.float32),
            grid_spec=pltpu.PrefetchScalarGridSpec(
                num_scalar_prefetch=0,
                grid=(2,),
                in_specs=[pl.BlockSpec((8, 128), lambda i: (i, 0)), w_spec],
                out_specs=pl.BlockSpec((8, 128), lambda i: (i, 0)),
            ),
        )(jnp.zeros((16, 128), jnp.float32), jnp.zeros((8, 128), jnp.float32))
        jax.block_until_ready(out)
        return True
    except Exception:
        return False


@functools.lru_cache(maxsize=None)
def _flat_store_ok(src_shape, dtype_name):
    """Can Mosaic lower the minor-dim-merging reshape (b, m, n) -> (b, m*n)?"""
    dst_shape = (src_shape[0], src_shape[1] * src_shape[2])
    dtype = jnp.dtype(dtype_name)

    def k(x_ref, o_ref):
        o_ref[...] = x_ref[...].reshape(dst_shape)

    try:
        out = pl.pallas_call(
            k, out_shape=jax.ShapeDtypeStruct(dst_shape, dtype),
        )(jnp.zeros(src_shape, dtype))
        jax.block_until_ready(out)
        return True
    except Exception:
        return False


def _const_block_spec(shape, index_map, single_buffer):
    """Constant (revisited, never re-fetched) operand block."""
    if single_buffer:
        return pl.BlockSpec(shape, index_map, pipeline_mode=pl.Buffered(1))
    return pl.BlockSpec(shape, index_map)


# ----------------------------------------------------------------------------
# Kernels.
# ----------------------------------------------------------------------------
def _adapter_kernel(x_ref, w_ref, b_ref, out_ref, attn_ref, *, use_bf16,
                    flat_out, flat_attn):
    bt, s, h = x_ref.shape

    # Fused QKV projection on all bt*s rows at once (one MXU pipeline fill).
    # The 1/sqrt(H) scale is pre-folded into the Q columns of w_ref / b_ref.
    x2 = x_ref[...].reshape(bt * s, h)
    qkv = jnp.dot(x2, w_ref[...], preferred_element_type=jnp.float32)
    qkv = (qkv + b_ref[...]).reshape(bt, s, 3 * h)
    q = qkv[:, :, 0 * h:1 * h]
    k = qkv[:, :, 1 * h:2 * h]
    v = qkv[:, :, 2 * h:3 * h]

    if use_bf16:
        qm, km = q.astype(jnp.bfloat16), k.astype(jnp.bfloat16)
    else:
        qm, km = q, k

    # scores = (q * scale) @ k^T as a last-dim contraction (no K transpose).
    scores = jnp.einsum("bqh,bkh->bqk", qm, km,
                        preferred_element_type=jnp.float32)

    # Numerically stable softmax, fully in f32 (user-facing output).
    scores = scores - jnp.max(scores, axis=-1, keepdims=True)
    e = jnp.exp(scores)
    p = e * pl.reciprocal(jnp.sum(e, axis=-1, keepdims=True), approx=False)

    if flat_attn:
        attn_ref[...] = p.reshape(bt, s * s).astype(attn_ref.dtype)
    else:
        attn_ref[...] = p.astype(attn_ref.dtype)

    if use_bf16:
        pm, vm = p.astype(jnp.bfloat16), v.astype(jnp.bfloat16)
    else:
        pm, vm = p, v
    out = jnp.einsum("bqk,bkh->bqh", pm, vm, preferred_element_type=jnp.float32)

    if flat_out:
        out_ref[...] = out.reshape(bt, s * h).astype(out_ref.dtype)
    else:
        out_ref[...] = out.astype(out_ref.dtype)


def _linear_v_kernel(x_ref, w_ref, b_ref, out_ref):
    # Single-key fast path: out = x @ Wv^T + bv.
    out_ref[...] = (jnp.dot(x_ref[...], w_ref[...],
                            preferred_element_type=jnp.float32)
                    + b_ref[...]).astype(out_ref.dtype)


# ----------------------------------------------------------------------------
# Block choosers / VMEM estimates.
# ----------------------------------------------------------------------------
def _block_vmem_bytes(bt, S, H, in_bytes, *, single_buffer_weights=True):
    """Inflated per-grid-step VMEM working-set estimate (bytes)."""
    rows = bt * S
    # Pipelined I/O blocks (double-buffered by Pallas).
    io = 2 * rows * H * in_bytes          # x
    io += 2 * rows * H * _F32             # attn_output block
    io += 2 * rows * S * _F32             # attn_weights block
    # Constant operands.
    wbuf = 1 if single_buffer_weights else 2
    wgt = wbuf * (3 * H * H * in_bytes + 3 * H * _F32)
    # Live intermediates: qkv, q/k/v slice copies, bf16 copies of q/k/p,
    # scores, e, p, plus possible relayout copies for the lane-dense stores.
    # 1.5x headroom because in-kernel slices/reshapes are not views.
    interm = (rows * 3 * H * _F32
              + 3 * rows * H * _F32
              + 2 * rows * H * in_bytes
              + rows * S * in_bytes
              + 3 * rows * S * _F32
              + rows * H * _F32 + rows * S * _F32)
    return io + wgt + int(1.5 * interm)


def _choose_block_batch(B, S, H, in_bytes, *, single_buffer_weights=True):
    """How many batch elements to pack per grid step (must divide B)."""
    budget = _vmem_budget_bytes()
    row_cap = 4096  # relaxed: more rows per step fills the MXU M dimension
    divisors = [d for d in range(1, B + 1) if B % d == 0]
    cands = [d for d in divisors
             if d * S <= row_cap
             and _block_vmem_bytes(d, S, H, in_bytes,
                                   single_buffer_weights=single_buffer_weights)
             <= budget]
    if not cands:
        # TODO(synk): very large H needs K/N tiling of the (H, 3H) weight;
        # bt=1 may still exceed the budget in that regime.
        cands = [1]
    bt = max(cands)
    # Prefer >=2 (ideally an even number of) grid steps so v7x's two
    # TensorCores both stay busy -- but never at the cost of starving the MXU.
    if B // bt < 2 or (B // bt) % 2 == 1:
        better = [d for d in cands
                  if B // d >= 2 and (B // d) % 2 == 0
                  and d * S >= min(512, bt * S)]
        if better:
            bt = max(better)
    return bt


def _rows_vmem_bytes_2d(r, H, in_bytes, *, single_buffer_weights=True):
    wbuf = 1 if single_buffer_weights else 2
    return (2 * r * H * in_bytes + 2 * r * H * _F32
            + wbuf * (H * H * in_bytes + H * _F32)
            + 2 * r * H * _F32)


def _choose_rows_2d(B, H, in_bytes):
    budget = _vmem_budget_bytes()
    cands = [d for d in range(8, min(B, 4096) + 1, 8)
             if B % d == 0 and _rows_vmem_bytes_2d(d, H, in_bytes) <= budget]
    if cands:
        return max(cands)
    # Small B or no multiple-of-8 divisor: one block over the whole batch.
    # TODO(synk): huge B with no multiple-of-8 divisor would need row padding.
    return B


# ----------------------------------------------------------------------------
# Wrappers.
# ----------------------------------------------------------------------------
def prepare_adapter_params(wq, wk, wv, bq, bk, bv, *, mm_dtype=jnp.bfloat16):
    """Precompute the fused operands ONCE per weight update (hoisted concat /
    transpose / cast; the 1/sqrt(H) scale is folded into the Q weights/bias)."""
    H = wq.shape[0]
    scale = jnp.float32(float(H) ** (-0.5))
    w_qkv = jnp.concatenate(
        [wq.T.astype(jnp.float32) * scale,
         wk.T.astype(jnp.float32),
         wv.T.astype(jnp.float32)], axis=1).astype(mm_dtype)
    b_qkv = jnp.concatenate(
        [bq.astype(jnp.float32) * scale,
         bk.astype(jnp.float32),
         bv.astype(jnp.float32)]).reshape(1, 3 * H).astype(jnp.float32)
    return {"w_qkv": w_qkv, "b_qkv": b_qkv,
            "wv_t": wv.T.astype(mm_dtype),
            "bv_row": bv.reshape(1, H).astype(jnp.float32)}


def _adapter_3d(x, w_qkv, b_qkv, out_dtype, use_bf16):
    B, S, H = x.shape
    mm_dtype = w_qkv.dtype
    in_bytes = jnp.dtype(mm_dtype).itemsize

    sb = _single_buffer_ok()
    bt = _choose_block_batch(B, S, H, in_bytes, single_buffer_weights=sb)
    grid = (B // bt,)

    # Lane-dense output slabs: flatten the minor dims when they are not
    # multiples of 128 so masked vst.msk partial stores become full stores.
    rows_ok = (bt % 8 == 0) or (bt == B)   # (8,128) rule on the flat block
    flat_attn = (S % 128 != 0) and rows_ok and _flat_store_ok((bt, S, S), "float32")
    flat_out = (H % 128 != 0) and rows_ok and _flat_store_ok((bt, S, H), "float32")

    kernel = functools.partial(_adapter_kernel, use_bf16=use_bf16,
                               flat_out=flat_out, flat_attn=flat_attn)
    out_shape = (
        jax.ShapeDtypeStruct((B, S * H) if flat_out else (B, S, H), out_dtype),
        jax.ShapeDtypeStruct((B, S * S) if flat_attn else (B, S, S), out_dtype),
    )
    out_spec = (pl.BlockSpec((bt, S * H), lambda b: (b, 0)) if flat_out
                else pl.BlockSpec((bt, S, H), lambda b: (b, 0, 0)))
    attn_spec = (pl.BlockSpec((bt, S * S), lambda b: (b, 0)) if flat_attn
                 else pl.BlockSpec((bt, S, S), lambda b: (b, 0, 0)))
    est = _block_vmem_bytes(bt, S, H, in_bytes, single_buffer_weights=sb)

    out, attn = pl.pallas_call(
        kernel,
        out_shape=out_shape,
        grid_spec=pltpu.PrefetchScalarGridSpec(
            num_scalar_prefetch=0,
            grid=grid,
            in_specs=[
                pl.BlockSpec((bt, S, H), lambda b: (b, 0, 0)),        # x
                _const_block_spec((H, 3 * H), lambda b: (0, 0), sb),  # W_qkv
                _const_block_spec((1, 3 * H), lambda b: (0, 0), sb),  # b_qkv
            ],
            out_specs=[out_spec, attn_spec],
        ),
        compiler_params=pltpu.CompilerParams(
            # TODO(synk): if profiles show the batch axis is not split across
            # v7x's two TensorCores, switch to pltpu.CORE_PARALLEL.
            dimension_semantics=("parallel",),
            vmem_limit_bytes=_vmem_limit_bytes(est),
        ),
    )(x.astype(mm_dtype), w_qkv, b_qkv)

    if flat_out:
        out = out.reshape(B, S, H)
    if flat_attn:
        attn = attn.reshape(B, S, S)
    return out, attn


def _adapter_2d(x, wv_t, bv_row, out_dtype):
    B, H = x.shape
    mm_dtype = wv_t.dtype
    in_bytes = jnp.dtype(mm_dtype).itemsize
    r = _choose_rows_2d(B, H, in_bytes)
    sb = _single_buffer_ok()
    est = _rows_vmem_bytes_2d(r, H, in_bytes, single_buffer_weights=sb)

    out = pl.pallas_call(
        _linear_v_kernel,
        out_shape=jax.ShapeDtypeStruct((B, H), out_dtype),
        grid_spec=pltpu.PrefetchScalarGridSpec(
            num_scalar_prefetch=0,
            grid=(B // r,),
            in_specs=[
                pl.BlockSpec((r, H), lambda b: (b, 0)),            # x rows
                _const_block_spec((H, H), lambda b: (0, 0), sb),   # Wv^T
                _const_block_spec((1, H), lambda b: (0, 0), sb),   # bv
            ],
            out_specs=pl.BlockSpec((r, H), lambda b: (b, 0)),
        ),
        compiler_params=pltpu.CompilerParams(
            dimension_semantics=("parallel",),
            vmem_limit_bytes=_vmem_limit_bytes(est),
        ),
    )(x.astype(mm_dtype), wv_t, bv_row)
    # Softmax over a single key is exactly 1.
    attn = jnp.ones((B, 1), dtype=out_dtype)
    return out, attn


def adapter_forward(x, wq, wk, wv, bq, bk, bv, *, bf16_matmuls=None,
                    params=None):
    """Pallas TPU forward of AdapterModule.

    x: (B, S, H) or (B, H); w*: (H, H) PyTorch (out, in) layout; b*: (H,).
    Returns (attn_output, attn_weights) matching AdapterModule.forward.

    bf16_matmuls: None -> auto (True; MXU is bf16-native on v5e/v6e/v7x, only
    matmul operands are cast, bias/softmax/outputs stay f32). Pass False for
    exact f32 matmuls. `params` (from prepare_adapter_params) hoists the
    fused-weight construction off the per-call path.
    """
    out_dtype = x.dtype
    use_bf16 = True if bf16_matmuls is None else bool(bf16_matmuls)
    if params is None:
        mm_dtype = jnp.bfloat16 if use_bf16 else x.dtype
        params = prepare_adapter_params(wq, wk, wv, bq, bk, bv,
                                        mm_dtype=mm_dtype)
    else:
        use_bf16 = params["w_qkv"].dtype == jnp.bfloat16

    if x.ndim == 2:
        return _adapter_2d(x, params["wv_t"], params["bv_row"], out_dtype)
    return _adapter_3d(x, params["w_qkv"], params["b_qkv"], out_dtype, use_bf16)


# ----------------------------------------------------------------------------
# Pure-JAX reference mirroring the PyTorch forward (high-precision matmuls).
# ----------------------------------------------------------------------------
def _reference(x, wq, wk, wv, bq, bk, bv):
    squeeze = x.ndim == 2
    if squeeze:
        x = x[:, None, :]
    H = x.shape[-1]
    hp = jax.lax.Precision.HIGHEST
    q = jnp.einsum("bsh,oh->bso", x, wq, precision=hp) + bq
    k = jnp.einsum("bsh,oh->bso", x, wk, precision=hp) + bk
    v = jnp.einsum("bsh,oh->bso", x, wv, precision=hp) + bv
    scores = jnp.einsum("bqh,bkh->bqk", q, k, precision=hp) * (float(H) ** -0.5)
    w = jax.nn.softmax(scores, axis=-1)
    out = jnp.einsum("bqk,bkh->bqh", w, v, precision=hp)
    if squeeze:
        return out[:, 0, :], w[:, 0, :]
    return out, w


if __name__ == "__main__":
    B, S, H = 2, 8, 32
    key = jax.random.PRNGKey(0)
    kx, kq, kk, kv, kbq, kbk, kbv, kx2 = jax.random.split(key, 8)

    x = jax.random.normal(kx, (B, S, H), dtype=jnp.float32)
    # nn.Linear(hidden, hidden): weight (H, H) in (out, in) layout, bias (H,).
    wq = jax.random.normal(kq, (H, H), dtype=jnp.float32) * 0.1
    wk = jax.random.normal(kk, (H, H), dtype=jnp.float32) * 0.1
    wv = jax.random.normal(kv, (H, H), dtype=jnp.float32) * 0.1
    bq = jax.random.normal(kbq, (H,), dtype=jnp.float32) * 0.1
    bk = jax.random.normal(kbk, (H,), dtype=jnp.float32) * 0.1
    bv = jax.random.normal(kbv, (H,), dtype=jnp.float32) * 0.1

    ref_out, ref_attn = _reference(x, wq, wk, wv, bq, bk, bv)

    # 3-D branch, f32 MXU operands.  Tolerance covers MXU multi-pass f32
    # rounding + the folded scale.
    out, attn = adapter_forward(x, wq, wk, wv, bq, bk, bv, bf16_matmuls=False)
    out, attn = jax.block_until_ready((out, attn))
    assert out.shape == (B, S, H) and attn.shape == (B, S, S)
    assert jnp.allclose(out, ref_out, atol=5e-3, rtol=5e-3)
    assert jnp.allclose(attn, ref_attn, atol=5e-3, rtol=5e-3)

    # 3-D branch, bf16 MXU operands (default fast path), with hoisted params.
    params = prepare_adapter_params(wq, wk, wv, bq, bk, bv,
                                    mm_dtype=jnp.bfloat16)
    out_bf, attn_bf = adapter_forward(x, wq, wk, wv, bq, bk, bv, params=params)
    out_bf, attn_bf = jax.block_until_ready((out_bf, attn_bf))
    assert jnp.allclose(out_bf, ref_out, atol=5e-2, rtol=5e-2)
    assert jnp.allclose(attn_bf, ref_attn, atol=5e-2, rtol=5e-2)

    # 2-D branch (x: (B, H)) -- single-key fast path.
    x2 = jax.random.normal(kx2, (B, H), dtype=jnp.float32)
    ref_out2, ref_attn2 = _reference(x2, wq, wk, wv, bq, bk, bv)
    out2, attn2 = adapter_forward(x2, wq, wk, wv, bq, bk, bv,
                                  bf16_matmuls=False)
    out2, attn2 = jax.block_until_ready((out2, attn2))
    assert out2.shape == (B, H) and attn2.shape == (B, 1)
    assert jnp.allclose(out2, ref_out2, atol=5e-3, rtol=5e-3)
    assert jnp.allclose(attn2, ref_attn2, atol=1e-6, rtol=1e-6)

    print("KERNEL_OK")
</pallas_src>

<mosaic_0001>
module attributes {stable_mosaic.version = 11 : i64} {
  func.func @k(%arg0: i32, %arg1: memref<8x128xf32, #tpu.memory_space<vmem>>, %arg2: memref<8x128xf32, #tpu.memory_space<vmem>>, %arg3: memref<8x128xf32, #tpu.memory_space<vmem>>) attributes {dimension_semantics = [#tpu.dimension_semantics<arbitrary>], iteration_bounds = array<i64: 2>, scalar_prefetch = 0 : i64, scratch_operands = 0 : i64, tpu.core_type = #tpu.core_type<tc>, window_params = [{transform_indices = @transform_0, window_bounds = array<i64: 8, 128>}, {pipeline_mode = #tpu.pipeline_mode<synchronous>, transform_indices = @transform_1, window_bounds = array<i64: 8, 128>}, {transform_indices = @transform_2, window_bounds = array<i64: 8, 128>}]} {
    %c0 = arith.constant 0 : index
    %c0_0 = arith.constant 0 : index
    %0 = vector.load %arg1[%c0, %c0_0] : memref<8x128xf32, #tpu.memory_space<vmem>>, vector<8x128xf32>
    %c0_1 = arith.constant 0 : index
    %c0_2 = arith.constant 0 : index
    %1 = vector.load %arg2[%c0_1, %c0_2] : memref<8x128xf32, #tpu.memory_space<vmem>>, vector<8x128xf32>
    %2 = arith.addf %0, %1 : vector<8x128xf32>
    %c0_3 = arith.constant 0 : index
    %c0_4 = arith.constant 0 : index
    %3 = vector.load %arg3[%c0_3, %c0_4] : memref<8x128xf32, #tpu.memory_space<vmem>>, vector<8x128xf32>
    tpu.vector_store %arg3[%c0_3, %c0_4], %2 {strides = array<i32>} : memref<8x128xf32, #tpu.memory_space<vmem>>, vector<8x128xf32>,
    return
  }
  func.func @transform_0(%arg0: i32) -> (i32, i32) {
    %c0_i32 = arith.constant 0 : i32
    %c0_i32_0 = arith.constant 0 : i32
    return %arg0, %c0_i32 : i32, i32
  }
  func.func @transform_1(%arg0: i32) -> (i32, i32) {
    %c0_i32 = arith.constant 0 : i32
    %c0_i32_0 = arith.constant 0 : i32
    %c0_i32_1 = arith.constant 0 : i32
    return %c0_i32, %c0_i32_0 : i32, i32
  }
  func.func @transform_2(%arg0: i32) -> (i32, i32) {
    %c0_i32 = arith.constant 0 : i32
    %c0_i32_0 = arith.constant 0 : i32
    return %arg0, %c0_i32 : i32, i32
  }
}

module attributes {stable_mosaic.version = 11 : i64} {
  func.func @k(%arg0: memref<2x8x8xf32, #tpu.memory_space<vmem>>, %arg1: memref<2x64xf32, #tpu.memory_space<vmem>>) attributes {dimension_semantics = [], scalar_prefetch = 0 : i64, scratch_operands = 0 : i64, tpu.core_type = #tpu.core_type<tc>} {
    %c0 = arith.constant 0 : index
    %c0_0 = arith.constant 0 : index
    %c0_1 = arith.constant 0 : index
    %0 = vector.load %arg0[%c0, %c0_0, %c0_1] : memref<2x8x8xf32, #tpu.memory_space<vmem>>, vector<2x8x8xf32>
    %1 = vector.shape_cast %0 : vector<2x8x8xf32> to vector<2x64xf32>
    %c0_2 = arith.constant 0 : index
    %c0_3 = arith.constant 0 : index
    %2 = vector.load %arg1[%c0_2, %c0_3] : memref<2x64xf32, #tpu.memory_space<vmem>>, vector<2x64xf32>
    tpu.vector_store %arg1[%c0_2, %c0_3], %1 {strides = array<i32>} : memref<2x64xf32, #tpu.memory_space<vmem>>, vector<2x64xf32>,
    return
  }
}

module attributes {stable_mosaic.version = 11 : i64} {
  func.func @k(%arg0: memref<2x8x32xf32, #tpu.memory_space<vmem>>, %arg1: memref<2x256xf32, #tpu.memory_space<vmem>>) attributes {dimension_semantics = [], scalar_prefetch = 0 : i64, scratch_operands = 0 : i64, tpu.core_type = #tpu.core_type<tc>} {
    %c0 = arith.constant 0 : index
    %c0_0 = arith.constant 0 : index
    %c0_1 = arith.constant 0 : index
    %0 = vector.load %arg0[%c0, %c0_0, %c0_1] : memref<2x8x32xf32, #tpu.memory_space<vmem>>, vector<2x8x32xf32>
    %1 = vector.shape_cast %0 : vector<2x8x32xf32> to vector<2x256xf32>
    %c0_2 = arith.constant 0 : index
    %c0_3 = arith.constant 0 : index
    %2 = vector.load %arg1[%c0_2, %c0_3] : memref<2x256xf32, #tpu.memory_space<vmem>>, vector<2x256xf32>
    tpu.vector_store %arg1[%c0_2, %c0_3], %1 {strides = array<i32>} : memref<2x256xf32, #tpu.memory_space<vmem>>, vector<2x256xf32>,
    return
  }
}

module attributes {stable_mosaic.version = 11 : i64} {
  func.func @_adapter_kernel(%arg0: i32, %arg1: memref<2x8x32xf32, #tpu.memory_space<vmem>>, %arg2: memref<32x96xf32, #tpu.memory_space<vmem>>, %arg3: memref<1x96xf32, #tpu.memory_space<vmem>>, %arg4: memref<2x8x32xf32, #tpu.memory_space<vmem>>, %arg5: memref<2x8x8xf32, #tpu.memory_space<vmem>>) attributes {dimension_semantics = [#tpu.dimension_semantics<parallel>], iteration_bounds = array<i64: 1>, scalar_prefetch = 0 : i64, scratch_operands = 0 : i64, tpu.core_type = #tpu.core_type<tc>, window_params = [{transform_indices = @transform_0, window_bounds = array<i64: 2, 8, 32>}, {pipeline_mode = #tpu.pipeline_mode<synchronous>, transform_indices = @transform_1, window_bounds = array<i64: 32, 96>}, {pipeline_mode = #tpu.pipeline_mode<synchronous>, transform_indices = @transform_2, window_bounds = array<i64: 1, 96>}, {transform_indices = @transform_3, window_bounds = array<i64: 2, 8, 32>}, {transform_indices = @transform_4, window_bounds = array<i64: 2, 8, 8>}]} {
    %c0 = arith.constant 0 : index
    %c0_0 = arith.constant 0 : index
    %c0_1 = arith.constant 0 : index
    %0 = vector.load %arg1[%c0, %c0_0, %c0_1] : memref<2x8x32xf32, #tpu.memory_space<vmem>>, vector<2x8x32xf32>
    %1 = vector.shape_cast %0 : vector<2x8x32xf32> to vector<16x32xf32>
    %c0_2 = arith.constant 0 : index
    %c0_3 = arith.constant 0 : index
    %2 = vector.load %arg2[%c0_2, %c0_3] : memref<32x96xf32, #tpu.memory_space<vmem>>, vector<32x96xf32>
    %cst = arith.constant dense<0.000000e+00> : vector<16x96xf32>
    %3 = tpu.matmul %1, %2, %cst {dimension_numbers = #tpu.dot_dimension_numbers<[1], [0], [0], [1], [0, 0, 1, 1], [], []>} : vector<16x32xf32>, vector<32x96xf32>, vector<16x96xf32> -> vector<16x96xf32>
    %c0_4 = arith.constant 0 : index
    %c0_5 = arith.constant 0 : index
    %4 = vector.load %arg3[%c0_4, %c0_5] : memref<1x96xf32, #tpu.memory_space<vmem>>, vector<1x96xf32>
    %5 = vector.broadcast %4 : vector<1x96xf32> to vector<16x96xf32>
    %6 = arith.addf %3, %5 : vector<16x96xf32>
    %7 = vector.shape_cast %6 : vector<16x96xf32> to vector<2x8x96xf32>
    %8 = vector.extract_strided_slice %7 {offsets = [0, 0, 0], sizes = [2, 8, 32], strides = [1, 1, 1]} : vector<2x8x96xf32> to vector<2x8x32xf32>
    %9 = vector.extract_strided_slice %7 {offsets = [0, 0, 32], sizes = [2, 8, 32], strides = [1, 1, 1]} : vector<2x8x96xf32> to vector<2x8x32xf32>
    %10 = vector.extract_strided_slice %7 {offsets = [0, 0, 64], sizes = [2, 8, 32], strides = [1, 1, 1]} : vector<2x8x96xf32> to vector<2x8x32xf32>
    "tpu.trace_start"() <{level = 10 : i32, message = "bqh,bkh->bqk"}> : () -> ()
    %cst_6 = arith.constant dense<0.000000e+00> : vector<2x8x8xf32>
    %11 = tpu.matmul %8, %9, %cst_6 {dimension_numbers = #tpu.dot_dimension_numbers<[2], [2], [1], [1], [0, 0, 0, 1, 1, 1], [0], [0]>} : vector<2x8x32xf32>, vector<2x8x32xf32>, vector<2x8x8xf32> -> vector<2x8x8xf32>
    "tpu.trace_stop"() : () -> ()
    %cst_7 = arith.constant dense<0xFF800000> : vector<2x8xf32>
    %12 = vector.multi_reduction <maximumf>, %11, %cst_7 [2] : vector<2x8x8xf32> to vector<2x8xf32>
    %13 = vector.shape_cast %12 : vector<2x8xf32> to vector<2x8x1xf32>
    %14 = vector.broadcast %13 : vector<2x8x1xf32> to vector<2x8x8xf32>
    %15 = arith.subf %11, %14 : vector<2x8x8xf32>
    %16 = math.exp %15 : vector<2x8x8xf32>
    %cst_8 = arith.constant dense<0.000000e+00> : vector<2x8xf32>
    %17 = vector.multi_reduction <add>, %16, %cst_8 [2] : vector<2x8x8xf32> to vector<2x8xf32>
    %18 = vector.shape_cast %17 : vector<2x8xf32> to vector<2x8x1xf32>
    %19 = tpu.reciprocal %18 : vector<2x8x1xf32> -> vector<2x8x1xf32>
    %20 = vector.broadcast %19 : vector<2x8x1xf32> to vector<2x8x8xf32>
    %21 = arith.mulf %16, %20 : vector<2x8x8xf32>
    %c0_9 = arith.constant 0 : index
    %c0_10 = arith.constant 0 : index
    %c0_11 = arith.constant 0 : index
    %22 = vector.load %arg5[%c0_9, %c0_10, %c0_11] : memref<2x8x8xf32, #tpu.memory_space<vmem>>, vector<2x8x8xf32>
    tpu.vector_store %arg5[%c0_9, %c0_10, %c0_11], %21 {strides = array<i32>} : memref<2x8x8xf32, #tpu.memory_space<vmem>>, vector<2x8x8xf32>,
    "tpu.trace_start"() <{level = 10 : i32, message = "bqk,bkh->bqh"}> : () -> ()
    %cst_12 = arith.constant dense<0.000000e+00> : vector<2x8x32xf32>
    %23 = tpu.matmul %21, %10, %cst_12 {dimension_numbers = #tpu.dot_dimension_numbers<[2], [1], [1], [2], [0, 0, 0, 1, 1, 2], [0], [0]>} : vector<2x8x8xf32>, vector<2x8x32xf32>, vector<2x8x32xf32> -> vector<2x8x32xf32>
    "tpu.trace_stop"() : () -> ()
    %c0_13 = arith.constant 0 : index
    %c0_14 = arith.constant 0 : index
    %c0_15 = arith.constant 0 : index
    %24 = vector.load %arg4[%c0_13, %c0_14, %c0_15] : memref<2x8x32xf32, #tpu.memory_space<vmem>>, vector<2x8x32xf32>
    tpu.vector_store %arg4[%c0_13, %c0_14, %c0_15], %23 {strides = array<i32>} : memref<2x8x32xf32, #tpu.memory_space<vmem>>, vector<2x8x32xf32>,
    return
  }
  func.func @transform_0(%arg0: i32) -> (i32, i32, i32) {
    %c0_i32 = arith.constant 0 : i32
    %c0_i32_0 = arith.constant 0 : i32
    %c0_i32_1 = arith.constant 0 : i32
    return %arg0, %c0_i32, %c0_i32_0 : i32, i32, i32
  }
  func.func @transform_1(%arg0: i32) -> (i32, i32) {
    %c0_i32 = arith.constant 0 : i32
    %c0_i32_0 = arith.constant 0 : i32
    %c0_i32_1 = arith.constant 0 : i32
    return %c0_i32, %c0_i32_0 : i32, i32
  }
  func.func @transform_2(%arg0: i32) -> (i32, i32) {
    %c0_i32 = arith.constant 0 : i32
    %c0_i32_0 = arith.constant 0 : i32
    %c0_i32_1 = arith.constant 0 : i32
    return %c0_i32, %c0_i32_0 : i32, i32
  }
  func.func @transform_3(%arg0: i32) -> (i32, i32, i32) {
    %c0_i32 = arith.constant 0 : i32
    %c0_i32_0 = arith.constant 0 : i32
    %c0_i32_1 = arith.constant 0 : i32
    return %arg0, %c0_i32, %c0_i32_0 : i32, i32, i32
  }
  func.func @transform_4(%arg0: i32) -> (i32, i32, i32) {
    %c0_i32 = arith.constant 0 : i32
    %c0_i32_0 = arith.constant 0 : i32
    %c0_i32_1 = arith.constant 0 : i32
    return %arg0, %c0_i32, %c0_i32_0 : i32, i32, i32
  }
}

</mosaic_0001>

<bundles_post_ra>
// kernel: tpu_custom_call.1
= control target key start
LH: loop header
LB: loop body
LE: loop exit
PB: predicated region body
PF: predicated region fallthrough
CT: control target
= control target key end

     0   :  { %7 = vsyncpa [#allocation3], 0  ;;  %s649_s0 = inlined_call_operand.hbm [shape: f32[16,128], index: 0, kind: input, shape index: {}]   ;;  %s650_s1 = inlined_call_operand.hbm [shape: f32[8,128], index: 1, kind: input, shape index: {}]   ;;  %s651_s2 = inlined_call_operand.hbm [shape: f32[16,128], index: 2, kind: output, shape index: {}]  }
   0x1   :  { %9 = vsyncpa [#allocation3 + $0x1], 0 }
   0x2   :  { %10 = vsyncpa [#allocation6], 0 }
   0x3   :  { %11 = vsyncpa [#allocation4], 0 }
   0x4   :  { %13 = vsyncpa [#allocation4 + $0x1], 0  ;;  %s483_s9 = smov 0   ;;  %s485_s10 = smov 0  }
   0x5   :  { %s487_s11 = smov 0   ;;  %s489_s12 = smov 0  }
   0x6 LB: > { %s504_s13 = sadd.s32 4294967295, %s463_s12   ;;  %s270_s14 = sadd.s32 4294967294, %s463_s12   ;;  %s463_s12 = sphi %s489_s12, %s674_s12   ;;  %s459_s11 = sphi %s487_s11, %s673_s11   ;;  %s455_s10 = sphi %s485_s10, %s672_s10   ;;  %s451_s9 = sphi %s483_s9, %s671_s9  }
   0x7   : > { %p39_p0 = scmp.ne.s32.totalorder %s455_s10, %s451_s9  ;;  %p652_p1 = scmp.eq.s32.totalorder %s504_s13, 0 }
   0x8   : > { %p90_p3 = scmp.eq.s32.totalorder %s270_s14, 1  ;;  %p271_p5 = scmp.ge.s32.totalorder %s463_s12, 1 }
   0x9   : > { %p513_p4 = por %p652_p1, %p39_p0  ;;  %p97_p7 = scmp.lt.s32.totalorder %s463_s12, 3 }
   0xa   : > { %p518_p6 = por %p90_p3, %p39_p0  ;;  %s465_s18 = smov [#allocation5]  }
   0xb   : > { %s656_s15 = scalar_select %p513_p4, 1, 0 }
   0xc   : > { %s657_s16 = scalar_select %p518_p6, 1, 0 }
   0xd   : > { %p523_p8 = pnand %p271_p5, %p97_p7  ;;  %s110_s19 = sshll.u32 %s465_s18, 4  ;;  %s111_s19 = int_to_ptr.vmem [resolvable:$true] %s110_s19 }
   0xe   : > { %s531_s20 = sadd.s32 1, %s463_s12   ;;  %s26_s24 = sadd.s32 1, %s459_s11 }
   0xf   : > { %s658_s17 = scalar_select %p523_p8, 1, 0 }
  0x10   : > { %p292_p10 = pneg %p523_p8  ;;  %s23_s22 = ssub.s32 %s463_s12, %s531_s20 }
  0x11   : > { %p541_p12 = scmp.eq.s32.totalorder %s23_s22, 0  ;;  %p33_p13 = scmp.ne.s32.totalorder %s459_s11, %s455_s10 }
  0x12   : > { %p535_p11 = pnand %p292_p10, %p652_p1  ;;  %s352_s25 = scalar_lea.vmem %s111_s19, 128 }
  0x13   : > { %p353_p3 = scmp.ne.s32.totalorder %s111_s19, %s352_s25  ;;  %p360_p9 = scmp.lt.s32.totalorder %s111_s19, %s111_s19 }
  0x14   : > { %p343_p0 = pneg %p535_p11  ;;  %p361_p2 = scmp.lt.s32.totalorder %s352_s25, %s352_s25 }
  0x16   : > { %p355_p5 = pnand %p353_p3, %p343_p0  ;;  %p362_p10 = por %p361_p2, %p360_p9 }
  0x18   : > { %p356_p7 = pneg %p355_p5 }
  0x1a   : > { %p363_p1 = pnand %p362_p10, %p356_p7 }
  0x1c   : > { %366 = shalt.err (!%p363_p1)
}
  0x1d   : > { %295 = dma.hbm_to_vmem [thread:$0]  (!%p535_p11), %s650_s1, 128, %s111_s19, [#allocation6]  }
  0x1e   : > { %s558_s28 = scalar_select %p541_p12, %s459_s11, %s26_s24  }
  0x1f   : > { %p34_p1 = scmp.eq.s32.totalorder %s463_s12, 0  ;;  %p661_p2 = scmp.eq.s32.totalorder %s504_s13, 1 }
  0x20   : > { %p305_p0 = scmp.lt.s32.totalorder %s463_s12, 2  ;;  %s121_s30 = sand.u32 1, %s459_s11  }
  0x21   : > { %p566_p9 = por %p661_p2, %p33_p13  ;;  %p35_p3 = por %p34_p1, %p33_p13 }
  0x22   : > { %s274_s3 = sshll.u32 %s121_s30, 3  ;;  %s275_s4 = sshll.u32 %s463_s12, 7 }
  0x23   : > { %s662_s29 = scalar_select %p566_p9, 1, 0 }
  0x24   : > { %s579_s7 = scalar_lea.hbm %s649_s0, %s275_s4  ;;  %s125_s8 = scalar_lea.vmem [#allocation2], %s274_s3 }
  0x25   : > { %s132_s14 = sshll.u32 %s125_s8, 4  ;;  %p581_p11 = pnand %p305_p0, %p35_p3  ;;  %s133_s14 = int_to_ptr.vmem [resolvable:$true] %s132_s14 }
  0x26   : > { %s122_s19 = scalar_lea.sflag [#allocation3], %s121_s30  ;;  %s367_s21 = scalar_lea.hbm %s579_s7, 128 }
  0x27   : > { %p368_p12 = scmp.ne.s32.totalorder %s579_s7, %s367_s21  ;;  %p369_p13 = pneg %p581_p11 }
  0x28   : > { %s372_s24 = scalar_lea.hbm %s649_s0, 256  ;;  %p373_p10 = scmp.lt.s32.totalorder %s579_s7, %s649_s0 }
  0x29   : > { %p370_p5 = pnand %p369_p13, %p368_p12  ;;  %p374_p1 = scmp.lt.s32.totalorder %s372_s24, %s367_s21 }
  0x2b   : > { %p371_p7 = pneg %p370_p5  ;;  %p375_p2 = por %p374_p1, %p373_p10 }
  0x2d   : > { %p376_p0 = pnand %p375_p2, %p371_p7 }
  0x2f   : > { %379 = shalt.err (!%p376_p0)
}
  0x30   : > { %s380_s27 = scalar_lea.vmem %s133_s14, 128  ;;  %s466_s30 = smov [#allocation2]  }
  0x31   : > { %p381_p3 = scmp.ne.s32.totalorder %s133_s14, %s380_s27  ;;  %s385_s3 = sshll.u32 %s466_s30, 4  ;;  %s386_s3 = int_to_ptr.vmem [resolvable:$false] %s385_s3 }
  0x32   : > { %s387_s4 = scalar_lea.vmem %s386_s3, 256  ;;  %p388_p12 = scmp.lt.s32.totalorder %s133_s14, %s386_s3 }
  0x33   : > { %p383_p6 = pnand %p381_p3, %p369_p13  ;;  %p389_p5 = scmp.lt.s32.totalorder %s387_s4, %s380_s27 }
  0x35   : > { %p384_p9 = pneg %p383_p6  ;;  %p390_p4 = por %p389_p5, %p388_p12 }
  0x37   : > { %p391_p8 = pnand %p390_p4, %p384_p9 }
  0x39   : > { %394 = shalt.err (!%p391_p8)
}
  0x3a   : > { %299 = dma.hbm_to_vmem [thread:$0]  (!%p581_p11), %s579_s7, 128, %s133_s14, %s122_s19  }
  0x3b   : > { %p664_p7 = scmp.ne.s32.totalorder %s658_s17, 0 }
  0x3c   : > { %s602_s5 = sand.u32 (!%p664_p7), 1, %s455_s10   ;;  %p665_p6 = scmp.ne.s32.totalorder (!%p664_p7), %s656_s15, 0 }
  0x3d   : > { %141 = sbr.rel (%p664_p7) target bundleno = 95 (0x5f), region = 28  ;;  %s277_s6 = sshll.u32 (!%p664_p7), %s602_s5, 3 }
  0x3e   : > { %s144_s8 = scalar_lea.sflag (!%p664_p7), [#allocation3], %s602_s5  ;;  %s147_s21 = scalar_lea.vmem (!%p664_p7), [#allocation2], %s277_s6 }
  0x42   : > { %438 = dma.done.wait (%p665_p6), %s144_s8, 128  }
  0x43   : > { %440 = vsyncadd (%p665_p6), %s144_s8, 4294967168  ;;  %p666_p4 = scmp.eq.s32.totalorder %s504_s13, 0 }
  0x45   : > { %442 = dma.done.wait (%p666_p4), [#allocation6], 128   ;;  %p667_p8 = pmov %p666_p4 }
  0x46   : > { %s171_s17 = scalar_lea.vmem [#allocation7], %s277_s6  ;;  %s281_s14 = sshll.u32 %s504_s13, 7  ;;  %v172_v0 = vld [vmem:[%s147_s21] sm:$0xff]  ;;  %v173_v1 = vld [vmem:[#allocation5] sm:$0xff] }
  0x47   : > { %444 = vsyncadd (%p667_p8), [#allocation6], 4294967168  ;;  %s190_s7 = sshll.u32 %s171_s17, 4  ;;  %v174_v2 = vadd.f32 %v173_v1, %v172_v0  ;;  %s188_s15 = scalar_lea.hbm %s651_s2, %s281_s14  ;;  %s191_s7 = int_to_ptr.vmem [resolvable:$true] %s190_s7 }
  0x48   : > { %s177_s22 = scalar_lea.sflag [#allocation4], %s602_s5  ;;  %s395_s23 = scalar_lea.vmem %s191_s7, 128 }
  0x49   : > { %175 = vst [vmem:[%s171_s17] sm:$0xff] %v174_v2  ;;  %p396_p9 = scmp.ne.s32.totalorder %s191_s7, %s395_s23  ;;  %p668_p11 = scmp.ne.s32.totalorder %s662_s29, 0 }
  0x4a   : > { %s467_s24 = smov [#allocation7]  }
  0x4b   : > { %p397_p13 = pnand %p396_p9, %p668_p11  ;;  %s399_s25 = sshll.u32 %s467_s24, 4  ;;  %s400_s25 = int_to_ptr.vmem [resolvable:$false] %s399_s25 }
  0x4c   : > { %s401_s26 = scalar_lea.vmem %s400_s25, 256  ;;  %p402_p1 = scmp.lt.s32.totalorder %s191_s7, %s400_s25 }
  0x4d   : > { %p398_p10 = pneg %p397_p13  ;;  %p403_p2 = scmp.lt.s32.totalorder %s401_s26, %s395_s23 }
  0x4f   : > { %p404_p0 = por %p403_p2, %p402_p1 }
  0x51   : > { %p405_p3 = pnand %p404_p0, %p398_p10 }
  0x53   : > { %408 = shalt.err (!%p405_p3)
}
  0x54   : > { %s409_s13 = scalar_lea.hbm %s188_s15, 128  ;;  %s413_s3 = scalar_lea.hbm %s651_s2, 256 }
  0x55   : > { %p410_p12 = scmp.ne.s32.totalorder %s188_s15, %s409_s13  ;;  %p414_p6 = scmp.lt.s32.totalorder %s188_s15, %s651_s2 }
  0x56   : > { %p415_p4 = scmp.lt.s32.totalorder %s413_s3, %s409_s13 }
  0x57   : > { %p411_p5 = pnand %p410_p12, %p668_p11 }
  0x58   : > { %p416_p8 = por %p415_p4, %p414_p6 }
  0x59   : > { %p412_p7 = pneg %p411_p5 }
  0x5b   : > { %p417_p9 = pnand %p416_p8, %p412_p7 }
  0x5d   : > { %420 = shalt.err (!%p417_p9)
}
  0x5e   : > { %290 = dma.vmem_to_hbm [thread:$0]  (%p668_p11), %s191_s7, 128, %s188_s15, %s177_s22  }
  0x5f PF: > { %s202_s6 = sand.u32 1, %s451_s9   ;;  %p669_p13 = scmp.ne.s32.totalorder %s657_s16, 0 }
  0x60   : > { %p670_p10 = scmp.ge.s32.totalorder %s463_s12, 2  ;;  %s203_s8 = scalar_lea.sflag [#allocation4], %s202_s6 }
  0x62   : > { %p301_p1 = pnand %p670_p10, %p669_p13 }
  0x64   : > { %p302_p2 = pneg %p301_p1 }
  0x66   : > { %446 = dma.done.wait (%p302_p2), %s203_s8, 128  }
  0x67   : > { %448 = vsyncadd (%p302_p2), %s203_s8, 4294967168  ;;  %p16_p0 = scmp.ge.s32.totalorder %s531_s20, 4   ;;  %s671_s9 = smov %s455_s10 }
  0x68   : > { %s672_s10 = smov %s459_s11  ;;  %s673_s11 = smov %s558_s28 }
  0x69   : > { %s674_s12 = smov %s531_s20  ;;  %18 = sbr.rel (!%p16_p0) target bundleno = 6 (0x6), region = 77 }
  0x6e   :  { %208 = vsyncpa [#allocation3], 1 }
  0x6f   :  { %210 = vsyncpa [#allocation3 + $0x1], 1 }
  0x70   :  { %211 = vsyncpa [#allocation6], 1 }
  0x71   :  { %212 = vsyncpa [#allocation4], 1 }
  0x72   :  { %214 = vsyncpa [#allocation4 + $0x1], 1 }

// kernel: tpu_custom_call.1
= control target key start
LH: loop header
LB: loop body
LE: loop exit
PB: predicated region body
PF: predicated region fallthrough
CT: control target
= control target key end

     0   :  { %6 = vsyncpa [#allocation3], 0  ;;  %s238_s0 = inlined_call_operand.hbm [shape: f32[2,8,8], index: 0, kind: input, shape index: {}]   ;;  %s239_s1 = inlined_call_operand.hbm [shape: f32[2,64], index: 1, kind: output, shape index: {}]  }
   0x1   :  { %7 = vsyncpa [#allocation4], 0  ;;  %s207_s6 = smov [#allocation2]  }
   0x2   :  { %s13_s7 = sshll.u32 %s207_s6, 4  ;;  %s14_s7 = int_to_ptr.vmem [resolvable:$true] %s13_s7 }
   0x3   :  { %s171_s8 = scalar_lea.vmem %s14_s7, 256  ;;  %p176_p1 = scmp.lt.s32.totalorder %s14_s7, %s14_s7 }
   0x4   :  { %p172_p0 = scmp.ne.s32.totalorder %s14_s7, %s171_s8  ;;  %p177_p2 = scmp.lt.s32.totalorder %s171_s8, %s171_s8 }
   0x6   :  { %p178_p3 = por %p177_p2, %p176_p1 }
   0x8   :  { %p179_p4 = pnand %p178_p3, %p172_p0 }
   0xa   :  { %182 = shalt.err (!%p179_p4)
}
   0xb   :  { %s208_s9 = smov 128   ;;  %s209_s10 = smov 8  }
   0xc   :  { %19 = dma.hbm_to_vmem [thread:$0]  %s238_s0, 256, %s14_s7, [#allocation3], %s208_s9, %s208_s9, %s209_s10  }
   0xd   :  { %203 = dma.done.wait [#allocation3], 256  }
   0xe   :  { %204 = vsyncadd [#allocation3], 4294967040  ;;  %v29_v0 = vlaneseq  ;;  %v210_v1 = vmov 1983009808   ;;  %v211_v4 = vmov 1934713408  }
   0xf   :  { %v27_v2 = vunpack.c.l.s4 %v210_v1  ;;  %v58_v5 = vunpack.c.l.s4 %v211_v4  ;;  %v23_v9 = vld [vmem:[#allocation2] sm:$0xff]  ;;  %v24_v10 = vld [vmem:[#allocation2 + $0x8] sm:$0xff]  ;;  %v212_v13 = vmov 0.0   ;;  %s213_s0 = smov 16   ;;  %s214_s13 = smov 24   ;;  %vm119_vm0 = vcmask 64512  }
  0x10   :  { %v30_v3 = vshrl.u32 %v29_v0, 7  ;;  %v40_v14 = vcombine.high %v24_v10, %v212_v13  ;;  %v25_v16 = vcombine.high %v23_v9, %v212_v13  ;;  %s215_s14 = smov 32   ;;  %s216_s15 = smov 40   ;;  %vm121_vm1 = vcmask 130048  }
  0x11   :  { %v28_v6 = vunpack.c.0.s8 %v27_v2  ;;  %v59_v7 = vunpack.c.0.s8 %v58_v5  ;;  %s217_s16 = smov 48   ;;  %s218_s17 = smov 56   ;;  %vm123_vm2 = vcmask 195584   ;;  %vm125_vm3 = vcmask 261120  }
  0x12   :  { %vm127_vm4 = vcmask 326656   ;;  %vm129_vm5 = vcmask 392192   ;;  %s219_s18 = smov [#allocation5]   ;;  %vm131_vm6 = vcmask 457728   ;;  %vm133_vm7 = vcmask 517120  }
  0x13   :  { %v31_v8 = vsub.s32 %v28_v6, %v30_v3  ;;  %v62_v11 = vsub.s32 %v59_v7, %v30_v3  ;;  %s141_s19 = sshll.u32 %s219_s18, 4  ;;  %s142_s19 = int_to_ptr.vmem [resolvable:$true] %s141_s19 }
  0x14   :  { %s183_s20 = scalar_lea.vmem %s142_s19, 32  ;;  %p188_p6 = scmp.lt.s32.totalorder %s142_s19, %s142_s19 }
  0x15   :  { %v32_v12 = vrot.slane %v23_v9, %v31_v8  ;;  %v47_v15 = vrot.slane %v24_v10, %v31_v8  ;;  %v39_v19 = vrot.slane %v25_v16, %v31_v8  ;;  %v54_v20 = vrot.slane %v40_v14, %v31_v8  ;;  %p184_p5 = scmp.ne.s32.totalorder %s142_s19, %s183_s20  ;;  %p189_p7 = scmp.lt.s32.totalorder %s183_s20, %s183_s20 }
  0x17   :  { %v56_v17 = vcombine.high %v32_v12, %v47_v15  ;;  %v55_v18 = vcombine.low %v32_v12, %v47_v15  ;;  %v71_v23 = vcombine.low %v39_v19, %v54_v20  ;;  %v72_v27 = vcombine.high %v39_v19, %v54_v20  ;;  %p190_p8 = por %p189_p7, %p188_p6 }
  0x19   :  { %v70_v21 = vrot.slane %v56_v17, %v62_v11  ;;  %v63_v22 = vrot.slane %v55_v18, %v62_v11  ;;  %v79_v26 = vrot.slane %v71_v23, %v62_v11  ;;  %v86_v29 = vrot.slane %v72_v27, %v62_v11  ;;  %p191_p9 = pnand %p190_p8, %p184_p5 }
  0x1b   :  { %96 = vrot.lane.b32.xlu0 %v70_v21, %s213_s0  ;;  %v88_v24 = vcombine.high %v70_v21, %v212_v13  ;;  %v87_v25 = vcombine.high %v63_v22, %v212_v13  ;;  %v89_v28 = vcombine.high %v79_v26, %v212_v13  ;;  %v90_v30 = vcombine.high %v86_v29, %v212_v13 }
  0x1d   :  { %100 = vrot.lane.b32.xlu1 %v88_v24, %s214_s13 }
  0x1f   :  { %92 = vrot.lane.b32.xlu0 %v87_v25, %s209_s10 }
  0x21   :  { %104 = vrot.lane.b32.xlu1 %v79_v26, %s215_s14 }
  0x23   :  { %108 = vrot.lane.b32.xlu0 %v89_v28, %s216_s15 }
  0x25   :  { %112 = vrot.lane.b32.xlu1 %v86_v29, %s217_s16 }
  0x27   :  { %116 = vrot.lane.b32.xlu0 %v90_v30, %s218_s17 }
  0x8d   :  { %v97_v31 = vpop.permute.xlu0 %96 }
  0x8f   :  { %v101_v32 = vpop.permute.xlu1 %100 }
  0x91   :  { %v93_v33 = vpop.permute.xlu0 %92 }
  0x92   :  { %v120_v34 = vsel %vm119_vm0, %v63_v22, %v93_v33 }
  0x93   :  { %v122_v35 = vsel %vm121_vm1, %v120_v34, %v97_v31  ;;  %v105_v36 = vpop.permute.xlu1 %104 }
  0x94   :  { %v124_v37 = vsel %vm123_vm2, %v122_v35, %v101_v32 }
  0x95   :  { %v126_v38 = vsel %vm125_vm3, %v124_v37, %v105_v36  ;;  %v109_v39 = vpop.permute.xlu0 %108 }
  0x96   :  { %v128_v40 = vsel %vm127_vm4, %v126_v38, %v109_v39 }
  0x97   :  { %v113_v41 = vpop.permute.xlu1 %112 }
  0x98   :  { %v130_v42 = vsel %vm129_vm5, %v128_v40, %v113_v41 }
  0x99   :  { %v117_v43 = vpop.permute.xlu0 %116 }
  0x9a   :  { %v132_v44 = vsel %vm131_vm6, %v130_v42, %v117_v43 }
  0x9b   :  { %134 = vst.msk [vmem:[#allocation5] sm:$0x3] %vm133_vm7, %v132_v44 }
  0x9c   :  { %194 = shalt.err (!%p191_p9)
}
  0x9d   :  { %144 = dma.vmem_to_hbm [thread:$0]  %s142_s19, 32, %s239_s1, [#allocation4]  }
  0x9e   :  { %205 = dma.done.wait [#allocation4], 32  }
  0x9f   :  { %206 = vsyncadd [#allocation4], 4294967264 }
  0xa0   :  { %148 = vsyncpa [#allocation3], 1 }
  0xa1   :  { %149 = vsyncpa [#allocation4], 1 }

// kernel: tpu_custom_call.1
= control target key start
LH: loop header
LB: loop body
LE: loop exit
PB: predicated region body
PF: predicated region fallthrough
CT: control target
= control target key end

     0   :  { %6 = vsyncpa [#allocation3], 0  ;;  %s232_s0 = inlined_call_operand.hbm [shape: f32[2,8,32], index: 0, kind: input, shape index: {}]   ;;  %s233_s1 = inlined_call_operand.hbm [shape: f32[2,256], index: 1, kind: output, shape index: {}]  }
   0x1   :  { %7 = vsyncpa [#allocation4], 0  ;;  %s206_s6 = smov [#allocation2]  }
   0x2   :  { %s13_s7 = sshll.u32 %s206_s6, 4  ;;  %s14_s7 = int_to_ptr.vmem [resolvable:$true] %s13_s7 }
   0x3   :  { %s170_s8 = scalar_lea.vmem %s14_s7, 256  ;;  %p175_p1 = scmp.lt.s32.totalorder %s14_s7, %s14_s7 }
   0x4   :  { %p171_p0 = scmp.ne.s32.totalorder %s14_s7, %s170_s8  ;;  %p176_p2 = scmp.lt.s32.totalorder %s170_s8, %s170_s8 }
   0x6   :  { %p177_p3 = por %p176_p2, %p175_p1 }
   0x8   :  { %p178_p4 = pnand %p177_p3, %p171_p0 }
   0xa   :  { %181 = shalt.err (!%p178_p4)
}
   0xb   :  { %s207_s9 = smov 128   ;;  %s208_s10 = smov 8  }
   0xc   :  { %19 = dma.hbm_to_vmem [thread:$0]  %s232_s0, 256, %s14_s7, [#allocation3], %s207_s9, %s207_s9, %s208_s10  }
   0xd   :  { %202 = dma.done.wait [#allocation3], 256  }
   0xe   :  { %203 = vsyncadd [#allocation3], 4294967040  ;;  %v29_v0 = vlaneseq  ;;  %v209_v1 = vmov 1983009808   ;;  %v210_v4 = vmov 1934713408  }
   0xf   :  { %v27_v2 = vunpack.c.l.s4 %v209_v1  ;;  %v58_v5 = vunpack.c.l.s4 %v210_v4  ;;  %v23_v9 = vld [vmem:[#allocation2] sm:$0xff]  ;;  %v24_v10 = vld [vmem:[#allocation2 + $0x8] sm:$0xff]  ;;  %v211_v13 = vmov 0.0   ;;  %s212_s0 = smov 64   ;;  %s213_s13 = smov 32   ;;  %vm115_vm0 = vcmask 261120  }
  0x10   :  { %v30_v3 = vshrl.u32 %v29_v0, 7  ;;  %v40_v14 = vcombine.high %v24_v10, %v211_v13  ;;  %v25_v16 = vcombine.high %v23_v9, %v211_v13  ;;  %s214_s14 = smov 96   ;;  %vm117_vm1 = vcmask 523264   ;;  %s215_s15 = smov [#allocation5]  }
  0x11   :  { %v28_v6 = vunpack.c.0.s8 %v27_v2  ;;  %v59_v7 = vunpack.c.0.s8 %v58_v5  ;;  %vm119_vm2 = vcmask 785408   ;;  %s142_s16 = sshll.u32 %s215_s15, 4  ;;  %s143_s16 = int_to_ptr.vmem [resolvable:$true] %s142_s16 }
  0x12   :  { %s182_s17 = scalar_lea.vmem %s143_s16, 64  ;;  %p187_p6 = scmp.lt.s32.totalorder %s143_s16, %s143_s16 }
  0x13   :  { %v31_v8 = vsub.s32 %v28_v6, %v30_v3  ;;  %v62_v11 = vsub.s32 %v59_v7, %v30_v3  ;;  %p183_p5 = scmp.ne.s32.totalorder %s143_s16, %s182_s17  ;;  %p188_p7 = scmp.lt.s32.totalorder %s182_s17, %s182_s17 }
  0x15   :  { %v32_v12 = vrot.slane %v23_v9, %v31_v8  ;;  %v47_v15 = vrot.slane %v24_v10, %v31_v8  ;;  %v39_v19 = vrot.slane %v25_v16, %v31_v8  ;;  %v54_v20 = vrot.slane %v40_v14, %v31_v8  ;;  %p189_p8 = por %p188_p7, %p187_p6 }
  0x17   :  { %v56_v17 = vcombine.high %v32_v12, %v47_v15  ;;  %v55_v18 = vcombine.low %v32_v12, %v47_v15  ;;  %v72_v23 = vcombine.high %v39_v19, %v54_v20  ;;  %v71_v24 = vcombine.low %v39_v19, %v54_v20  ;;  %p190_p9 = pnand %p189_p8, %p183_p5 }
  0x19   :  { %v70_v21 = vrot.slane %v56_v17, %v62_v11  ;;  %v63_v22 = vrot.slane %v55_v18, %v62_v11  ;;  %v86_v26 = vrot.slane %v72_v23, %v62_v11  ;;  %v79_v27 = vrot.slane %v71_v24, %v62_v11 }
  0x1b   :  { %96 = vrot.lane.b32.xlu1 %v70_v21, %s212_s0  ;;  %v87_v25 = vcombine.high %v63_v22, %v211_v13  ;;  %v89_v28 = vcombine.high %v79_v27, %v211_v13  ;;  %v90_v29 = vcombine.high %v86_v26, %v211_v13  ;;  %v88_v30 = vcombine.high %v70_v21, %v211_v13 }
  0x1d   :  { %92 = vrot.lane.b32.xlu0 %v87_v25, %s213_s13 }
  0x1f   :  { %108 = vrot.lane.b32.xlu1 %v86_v26, %s212_s0 }
  0x21   :  { %104 = vrot.lane.b32.xlu0 %v89_v28, %s213_s13 }
  0x23   :  { %112 = vrot.lane.b32.xlu1 %v90_v29, %s214_s14 }
  0x25   :  { %100 = vrot.lane.b32.xlu0 %v88_v30, %s214_s14 }
  0x8d   :  { %v97_v31 = vpop.permute.xlu1 %96 }
  0x8f   :  { %v93_v32 = vpop.permute.xlu0 %92 }
  0x90   :  { %v116_v35 = vsel %vm115_vm0, %v63_v22, %v93_v32 }
  0x91   :  { %v109_v33 = vpop.permute.xlu1 %108  ;;  %v118_v39 = vsel %vm117_vm1, %v116_v35, %v97_v31 }
  0x93   :  { %v105_v34 = vpop.permute.xlu0 %104 }
  0x94   :  { %v121_v36 = vsel %vm115_vm0, %v79_v27, %v105_v34 }
  0x95   :  { %v113_v37 = vpop.permute.xlu1 %112  ;;  %v122_v38 = vsel %vm117_vm1, %v121_v36, %v109_v33 }
  0x96   :  { %v123_v41 = vsel %vm119_vm2, %v122_v38, %v113_v37 }
  0x97   :  { %v101_v40 = vpop.permute.xlu0 %100 }
  0x98   :  { %v120_v42 = vsel %vm119_vm2, %v118_v39, %v101_v40 }
  0x99   :  { %v126_v43 = vcombine.low %v120_v42, %v123_v41 }
  0x9b   :  { %151 = vst.sshfl [vmem:[#allocation5] sm:$0x33 pattern:$0x76325410] %v126_v43 }
  0x9c   :  { %193 = shalt.err (!%p190_p9)
}
  0x9d   :  { %145 = dma.vmem_to_hbm [thread:$0]  %s143_s16, 64, %s233_s1, [#allocation4]  }
  0x9e   :  { %204 = dma.done.wait [#allocation4], 64  }
  0x9f   :  { %205 = vsyncadd [#allocation4], 4294967232 }
  0xa0   :  { %149 = vsyncpa [#allocation3], 1 }
  0xa1   :  { %150 = vsyncpa [#allocation4], 1 }

// kernel: tpu_custom_call.1
= control target key start
LH: loop header
LB: loop body
LE: loop exit
PB: predicated region body
PF: predicated region fallthrough
CT: control target
= control target key end

     0   :  { %10 = vsyncpa [#allocation3], 0  ;;  %s750_s0 = inlined_call_operand.hbm [shape: f32[2,8,32], index: 0, kind: input, shape index: {}]   ;;  %s751_s1 = inlined_call_operand.hbm [shape: f32[32,96], index: 1, kind: input, shape index: {}]   ;;  %s752_s2 = inlined_call_operand.vmem [shape: f32[1,96], index: 2, kind: input, shape index: {}]   ;;  %s753_s3 = inlined_call_operand.hbm [shape: f32[2,8,32], index: 3, kind: output, shape index: {0}]   ;;  %s754_s4 = inlined_call_operand.hbm [shape: f32[2,8,8], index: 4, kind: output, shape index: {1}]  }
   0x1   :  { %11 = vsyncpa [#allocation6], 0 }
   0x2   :  { %12 = vsyncpa [#allocation4], 0 }
   0x3   :  { %13 = vsyncpa [#allocation9], 0  ;;  %s668_s15 = smov [#allocation2]  }
   0x4   :  { %s19_s16 = sshll.u32 %s668_s15, 4  ;;  %s20_s16 = int_to_ptr.vmem [resolvable:$true] %s19_s16 }
   0x5   :  { %s588_s17 = scalar_lea.vmem %s20_s16, 256  ;;  %p593_p1 = scmp.lt.s32.totalorder %s20_s16, %s20_s16 }
   0x6   :  { %p589_p0 = scmp.ne.s32.totalorder %s20_s16, %s588_s17  ;;  %p594_p2 = scmp.lt.s32.totalorder %s588_s17, %s588_s17 }
   0x8   :  { %p595_p3 = por %p594_p2, %p593_p1 }
   0xa   :  { %p596_p4 = pnand %p595_p3, %p589_p0 }
   0xc   :  { %599 = shalt.err (!%p596_p4)
}
   0xd   :  { %s669_s18 = smov 128   ;;  %s670_s19 = smov 8  }
   0xe   :  { %25 = dma.hbm_to_vmem [thread:$0]  %s750_s0, 256, %s20_s16, [#allocation3], %s669_s18, %s669_s18, %s670_s19  }
   0xf   :  { %s671_s22 = smov [#allocation5]  }
  0x10   :  { %s31_s23 = sshll.u32 %s671_s22, 4  ;;  %s32_s23 = int_to_ptr.vmem [resolvable:$true] %s31_s23 }
  0x11   :  { %s608_s24 = scalar_lea.vmem %s32_s23, 512  ;;  %p613_p6 = scmp.lt.s32.totalorder %s32_s23, %s32_s23 }
  0x12   :  { %p609_p5 = scmp.ne.s32.totalorder %s32_s23, %s608_s24  ;;  %p614_p7 = scmp.lt.s32.totalorder %s608_s24, %s608_s24 }
  0x14   :  { %p615_p8 = por %p614_p7, %p613_p6 }
  0x16   :  { %p616_p9 = pnand %p615_p8, %p609_p5 }
  0x18   :  { %619 = shalt.err (!%p616_p9)
}
  0x19   :  { %37 = dma.hbm_to_vmem [thread:$0]  %s751_s1, 512, %s32_s23, [#allocation6], %s669_s18, %s669_s18, %s670_s19  }
  0x1a   :  { %660 = dma.done.wait [#allocation3], 256  }
  0x1b   :  { %661 = vsyncadd [#allocation3], 4294967040 }
  0x1c   :  { %662 = dma.done.wait [#allocation6], 512  }
  0x1d   :  { %663 = vsyncadd [#allocation6], 4294966784  ;;  %vm59_vm0 = vcmask 261120   ;;  %v51_v0 = vld [vmem:[#allocation5 + $0x18] sm:$0xff]  ;;  %v50_v1 = vld [vmem:[#allocation5 + $0x10] sm:$0xff]  ;;  %v672_v6 = vmov 0.0  }
  0x1e   :  { %531 = vmatprep.subr.mxu0 %v51_v0  ;;  %v46_v2 = vld [vmem:[#allocation2] sm:$0xff]  ;;  %v49_v3 = vld [vmem:[#allocation5 + $0x8] sm:$0xff]  ;;  %v48_v4 = vld [vmem:[#allocation5] sm:$0xff]  ;;  %542 = vmatprep.subr.mxu1 %v672_v6  ;;  %vm673_vm1 = vmmov 0   ;;  %s674_s27 = smov 96   ;;  %vm295_vm2 = vcmask 64512  }
  0x1f   :  { %532 = vmatpush3.msra.mxu0 %v51_v0  ;;  %539 = vmatprep.mubr.msk.f32.mxu0 %vm59_vm0, %v46_v2  ;;  %v47_v5 = vld [vmem:[#allocation2 + $0x8] sm:$0xff]  ;;  %v508_v8 = vld [vmem:[%s752_s2] ss:$0 sm:$0xff]  ;;  %s675_s2 = smov 64   ;;  %s676_s28 = smov [#allocation8]  }
  0x20   :  { %533 = vmatprep.subr.mxu0 %v50_v1  ;;  %544 = vmatprep.mubr.msk.f32.mxu1 %vm673_vm1, %v672_v6  ;;  %s491_s29 = sshll.u32 %s676_s28, 4  ;;  %s492_s29 = int_to_ptr.vmem [resolvable:$true] %s491_s29 }
  0x21   :  { %534 = vmatpush3.msra.mxu0 %v50_v1  ;;  %s620_s30 = scalar_lea.vmem %s492_s29, 256  ;;  %p625_p11 = scmp.lt.s32.totalorder %s492_s29, %s492_s29 }
  0x22   :  { %535 = vmatprep.subr.mxu0 %v49_v3  ;;  %p621_p10 = scmp.ne.s32.totalorder %s492_s29, %s620_s30  ;;  %p626_p12 = scmp.lt.s32.totalorder %s620_s30, %s620_s30 }
  0x23   :  { %536 = vmatpush3.msra.mxu0 %v49_v3 }
  0x24   :  { %537 = vmatprep.subr.mxu0 %v48_v4  ;;  %p627_p13 = por %p626_p12, %p625_p11 }
  0x25   :  { %538 = vmatpush3.msra.mxu0 %v48_v4 }
  0x26   :  { %540 = vmatmul.mubr.msk.f32.vlgmr.msra.gmra.mxu0 %vm59_vm0, %v47_v5  ;;  %552 = vmatprep.subr.mxu0 %v672_v6  ;;  %p628_p0 = pnand %p627_p13, %p621_p10 }
  0x27   :  { %554 = vmatprep.mubr.msk.f32.mxu0 %vm673_vm1, %v672_v6 }
  0xe6   :  { %v541_v7 = vpop.f32.mrf.mxu0 }
  0xe7   :  { %v138_v11 = vadd.f32 %v541_v7, %v508_v8 }
  0xe8   :  { %v132_v9 = vpop.f32.mrf.mxu0 }
  0xe9   :  { %v133_v10 = vadd.f32 %v508_v8, %v132_v9 }
  0xeb   :  { %142 = vrot.lane.b32.xlu0 %v133_v10, %s674_s27 }
  0xef   :  { %219 = vrot.lane.b32.xlu0 %v138_v11, %s674_s27 }
 0x15d   :  { %v143_v12 = vpop.permute.xlu0 %142 }
 0x15e   :  { %543 = vmatpush3.xpose.msk.msra.mxu1 %vm59_vm0, %v143_v12 }
 0x15f   :  { %547 = vmatprep.subr.mxu1 %v672_v6 }
 0x161   :  { %545 = vmatmul.mubr.msk.f32.vlgmr.msra.gmra.mxu1 %vm59_vm0, %v133_v10  ;;  %v220_v13 = vpop.permute.xlu0 %219 }
 0x162   :  { %548 = vmatpush3.xpose.msk.msra.mxu1 %vm59_vm0, %v220_v13  ;;  %549 = vmatprep.mubr.msk.f32.mxu1 %vm673_vm1, %v672_v6 }
 0x163   :  { %557 = vmatprep.subr.mxu1 %v672_v6 }
 0x165   :  { %550 = vmatmul.mubr.msk.f32.vlgmr.msra.gmra.mxu1 %vm59_vm0, %v138_v11 }
 0x166   :  { %559 = vmatprep.mubr.msk.f32.mxu1 %vm673_vm1, %v672_v6 }
 0x221   :  { %v214_v14 = vpop.f32.mrf.mxu1 }
 0x222   :  { %v296_v15 = vsel %vm295_vm2, %v214_v14, -inf }
 0x223   :  { %297 = vmax.xlane.f32.xlu1 %v296_v15  ;;  %v546_v16 = vpop.f32.mrf.mxu1 }
 0x225   :  { %v291_v17 = vpop.f32.mrf.mxu1 }
 0x226   :  { %v299_v18 = vsel %vm295_vm2, %v291_v17, -inf }
 0x227   :  { %300 = vmax.xlane.f32.xlu1 %v299_v18  ;;  %v551_v19 = vpop.f32.mrf.mxu1 }
 0x238   :  { %320 = vrot.lane.b32.xlu1 %v133_v10, %s675_s2 }
 0x2ac   :  { %v298_v20 = vpop.xlane.xlu1 %297 }
 0x2ad   :  { %v302_v21 = vsub.f32 %v214_v14, %v298_v20 }
 0x2af   :  { %v304_v22 = vmul.f32 1.442695, %v302_v21 }
 0x2b0   :  { %v301_v23 = vpop.xlane.xlu1 %300 }
 0x2b1   :  { %572 = vpow2.f32 %v304_v22  ;;  %v303_v24 = vsub.f32 %v291_v17, %v301_v23 }
 0x2b3   :  { %v306_v25 = vmul.f32 1.442695, %v303_v24 }
 0x2b4   :  { %v321_v26 = vpop.permute.xlu1 %320 }
 0x2b5   :  { %574 = vpow2.f32 %v306_v25  ;;  %553 = vmatpush3.msra.mxu0 %v321_v26 }
 0x2be   :  { %v573_v27 = vpop.eup %572 }
 0x2bf   :  { %v308_v28 = vsel %vm295_vm2, %v573_v27, 0.0 }
 0x2c0   :  { %309 = vadd.xlane.f32.xlu0 %v308_v28 }
 0x2c2   :  { %v575_v29 = vpop.eup %574 }
 0x2c3   :  { %v311_v30 = vsel %vm295_vm2, %v575_v29, 0.0 }
 0x2c4   :  { %312 = vadd.xlane.f32.xlu1 %v311_v30 }
 0x2d5   :  { %396 = vrot.lane.b32.xlu1 %v138_v11, %s675_s2 }
 0x349   :  { %v310_v31 = vpop.xlane.xlu0 %309 }
 0x34a   :  { %576 = vrcp.f32 %v310_v31 }
 0x34d   :  { %v313_v32 = vpop.xlane.xlu1 %312 }
 0x34e   :  { %578 = vrcp.f32 %v313_v32 }
 0x351   :  { %v397_v33 = vpop.permute.xlu1 %396 }
 0x352   :  { %558 = vmatpush3.msra.mxu1 %v397_v33 }
 0x357   :  { %v577_v34 = vpop.eup %576 }
 0x358   :  { %v316_v35 = vmul.f32 %v577_v34, %v573_v27 }
 0x35a   :  { %555 = vmatmul.mubr.msk.f32.vlgmr.msra.gmra.mxu0 %vm295_vm2, %v316_v35  ;;  %318 = vst.msk [vmem:[#allocation8] sm:$0xff] %vm295_vm2, %v316_v35 }
 0x35b   :  { %v579_v36 = vpop.eup %578 }
 0x35c   :  { %v317_v37 = vmul.f32 %v579_v36, %v575_v29 }
 0x35e   :  { %560 = vmatmul.mubr.msk.f32.vlgmr.msra.gmra.mxu1 %vm295_vm2, %v317_v37  ;;  %319 = vst.msk [vmem:[#allocation8 + $0x8] sm:$0xff] %vm295_vm2, %v317_v37 }
 0x35f   :  { %631 = shalt.err (!%p628_p0)
}
 0x360   :  { %497 = dma.vmem_to_hbm [thread:$0]  %s492_s29, 256, %s754_s4, [#allocation9], %s669_s18, %s669_s18, %s670_s19  }
 0x361   :  { %s677_s7 = smov [#allocation7]  }
 0x362   :  { %s479_s8 = sshll.u32 %s677_s7, 4  ;;  %s480_s8 = int_to_ptr.vmem [resolvable:$true] %s479_s8 }
 0x363   :  { %s640_s9 = scalar_lea.vmem %s480_s8, 256  ;;  %p645_p2 = scmp.lt.s32.totalorder %s480_s8, %s480_s8 }
 0x364   :  { %p641_p1 = scmp.ne.s32.totalorder %s480_s8, %s640_s9  ;;  %p646_p3 = scmp.lt.s32.totalorder %s640_s9, %s640_s9 }
 0x366   :  { %p647_p4 = por %p646_p3, %p645_p2 }
 0x368   :  { %p648_p5 = pnand %p647_p4, %p641_p1 }
 0x41a   :  { %v392_v38 = vpop.f32.mrf.mxu0 }
 0x41b   :  { %472 = vst.msk [vmem:[#allocation7] sm:$0xff] %vm59_vm0, %v392_v38 }
 0x41c   :  { %v556_v39 = vpop.f32.mrf.mxu0 }
 0x41e   :  { %v468_v40 = vpop.f32.mrf.mxu1 }
 0x41f   :  { %473 = vst.msk [vmem:[#allocation7 + $0x8] sm:$0xff] %vm59_vm0, %v468_v40 }
 0x420   :  { %v561_v41 = vpop.f32.mrf.mxu1 }
 0x421   :  { %651 = shalt.err (!%p648_p5)
}
 0x422   :  { %485 = dma.vmem_to_hbm [thread:$0]  %s480_s8, 256, %s753_s3, [#allocation4], %s669_s18, %s669_s18, %s670_s19  }
 0x423   :  { %664 = dma.done.wait [#allocation4], 256  }
 0x424   :  { %665 = vsyncadd [#allocation4], 4294967040 }
 0x425   :  { %666 = dma.done.wait [#allocation9], 256  }
 0x426   :  { %667 = vsyncadd [#allocation9], 4294967040 }
 0x427   :  { %504 = vsyncpa [#allocation3], 1 }
 0x428   :  { %505 = vsyncpa [#allocation6], 1 }
 0x429   :  { %506 = vsyncpa [#allocation4], 1 }
 0x42a   :  { %507 = vsyncpa [#allocation9], 1 }

</bundles_post_ra>
